<compile_context>
chip_gen: v7x
topology: tpu7x:2x2x1
jax: 0.10.0
libtpu: 0.0.40
codegen_flags: <defaults>
</compile_context>

<pallas_src>
import functools

import jax
import jax.numpy as jnp
import numpy as np
from jax.experimental import pallas as pl
from jax.experimental.pallas import tpu as pltpu


def _round_up(x, m):
    return ((x + m - 1) // m) * m


def _sum_all(x):
    """Full reduction of a 2-D tile to shape (1, 1) (lane reduce, then sublane)."""
    return jnp.sum(jnp.sum(x, axis=1, keepdims=True), axis=0, keepdims=True)


def _style_disperser_kernel(x_ref, w1_ref, b1_ref, w2_ref, b2_ref,
                            z_ref, normloss_ref, stdloss_ref,
                            tmean_ref, tstd_ref, norm_acc_ref, unit_acc_ref,
                            *, same, n_total, d_out, normalize, margin, eps):
    i = pl.program_id(0)

    # ---- encoder: Linear -> ReLU -> Linear.  bf16 operands on the MXU with
    # f32 accumulation; everything downstream stays f32.
    xb = x_ref[...]                                                  # bf16 tile
    h = jnp.dot(xb, w1_ref[...], preferred_element_type=jnp.float32) + b1_ref[...]
    h = jnp.maximum(h, 0.0)
    z = jnp.dot(h.astype(jnp.bfloat16), w2_ref[...],
                preferred_element_type=jnp.float32) + b2_ref[...]    # (tile_n, out_p) f32

    # Unpadded store: only the real output lanes go back to HBM.
    z_ref[...] = z[:, :d_out]

    # ---- per-row quantities (one EUP rsqrt per row; padded lanes are 0) ----
    row_sq = jnp.sum(z * z, axis=1, keepdims=True)        # (tile_n, 1)
    inv_row = jax.lax.rsqrt(row_sq + eps)                 # EUP slot
    row_norm = row_sq * inv_row                           # == sqrt(row_sq)
    unit = z * inv_row                                    # unit rows (tile_n, out_p)

    # ---- first tile: "true"-block statistics + accumulator init ----
    @pl.when(i == 0)
    def _():
        tile_n = z.shape[0]
        rows = jax.lax.broadcasted_iota(jnp.int32, (tile_n, 1), 0)
        tmask = (rows < same).astype(jnp.float32)          # 1.0 for true rows
        tmean = jnp.sum(z * tmask, axis=0, keepdims=True) * (1.0 / same)
        centered = (z - tmean) * tmask
        # torch.std default is the unbiased estimator (ddof = 1)
        var = jnp.sum(centered * centered, axis=0, keepdims=True) * (1.0 / (same - 1))
        tmean_ref[...] = tmean
        tstd_ref[...] = _sum_all(jnp.sqrt(var))
        norm_acc_ref[...] = jnp.zeros_like(norm_acc_ref)
        # Pre-subtract the true rows' unit vectors so the unconditional
        # accumulation below leaves only the random rows in the accumulator.
        unit_acc_ref[...] = -jnp.sum(unit * tmask, axis=0, keepdims=True)

    # ---- every tile: accumulate (independent of true_mean -> no cross-tile
    # data dependence in the per-tile math) ----
    norm_acc_ref[...] += _sum_all((row_norm - 1.0) ** 2)
    unit_acc_ref[...] += jnp.sum(unit, axis=0, keepdims=True)

    # ---- last tile: finalize the two scalar losses ----
    @pl.when(i == pl.num_programs(0) - 1)
    def _():
        normloss_ref[...] = normalize * norm_acc_ref[...] * (1.0 / n_total)
        tmean = tmean_ref[...]                              # (1, out_p)
        inv_tnorm = jax.lax.rsqrt(_sum_all(tmean * tmean) + eps)
        # sum_over_random cos(z_r, tmean) = dot(sum_r unit_r, tmean) / ||tmean||
        cos_sum = _sum_all(tmean * unit_acc_ref[...]) * inv_tnorm
        random_true_std = cos_sum * (1.0 / (n_total - same))
        stdloss_ref[...] = tstd_ref[...] - random_true_std + margin


def style_disperser_forward(x, w1, b1, w2, b2, *, same,
                            normalize=100.0, margin=1.0, tile_n=2048):
    """Fused StyleDisperser.forward.  Returns (normloss, stdloss, ret_z)."""
    n, d_in = x.shape
    _, hid = w1.shape
    _, d_out = w2.shape

    tile_n = min(int(tile_n), n)
    assert n % tile_n == 0, "batch size must be a multiple of the row tile"
    assert tile_n == n or tile_n % 8 == 0, "row tile must be sublane (8) aligned"
    assert 2 <= same < n, "need >=2 'true' rows and >=1 'random' row"
    # TODO(synk): lift this by spilling true-block stats across tiles if needed.
    assert same <= tile_n, "the 'true' block must fit inside the first row tile"

    # bf16 activations into the MXU (halves the x HBM read; no-op if already bf16).
    xb = x if x.dtype == jnp.bfloat16 else x.astype(jnp.bfloat16)

    # Lane-dense padding of the feature dims.  Padded weight rows/cols are zero,
    # so the padded lanes of h/z are exactly zero and every reduction is
    # unchanged.  (Kept at 128, NOT 256: the kernel is bandwidth-bound.)
    hid_p = _round_up(hid, 128)
    out_p = _round_up(d_out, 128)
    w1p = jnp.pad(w1.astype(jnp.float32), ((0, 0), (0, hid_p - hid))).astype(jnp.bfloat16)
    b1p = jnp.pad(jnp.reshape(b1, (1, hid)).astype(jnp.float32),
                  ((0, 0), (0, hid_p - hid)))
    w2p = jnp.pad(w2.astype(jnp.float32),
                  ((0, hid_p - hid), (0, out_p - d_out))).astype(jnp.bfloat16)
    b2p = jnp.pad(jnp.reshape(b2, (1, d_out)).astype(jnp.float32),
                  ((0, 0), (0, out_p - d_out)))

    # VMEM budget from actual buffer math (double-buffered x/z tiles, resident
    # bf16 weights, f32 intermediates h/z/unit, small scratch).
    vmem_need = (2 * tile_n * d_in * 2                    # x tiles (bf16, 2 bufs)
                 + 2 * tile_n * d_out * 4                 # z out tiles (f32, 2 bufs)
                 + 2 * (d_in * hid_p + hid_p * out_p) * 2 # bf16 weights (2 bufs)
                 + 2 * (hid_p + out_p) * 4                # biases
                 + tile_n * hid_p * 4                     # h intermediate
                 + 2 * tile_n * out_p * 4                 # z + unit intermediates
                 + (2 * out_p + 8) * 4)                   # scratch accumulators
    assert vmem_need < 40 * 1024 * 1024, "tile_n too large for VMEM; reduce it"
    vmem_limit = min(48 * 1024 * 1024, max(32 * 1024 * 1024, vmem_need + (8 << 20)))

    kernel = functools.partial(
        _style_disperser_kernel,
        same=int(same), n_total=int(n), d_out=int(d_out),
        normalize=float(normalize), margin=float(margin), eps=1e-12)

    grid = (n // tile_n,)
    flops = 2 * n * (d_in * hid_p + hid_p * out_p)
    bytes_accessed = (2 * n * d_in + 4 * n * d_out
                      + 2 * (d_in * hid_p + hid_p * out_p)
                      + 4 * (hid_p + out_p) + 8)

    z, normloss, stdloss = pl.pallas_call(
        kernel,
        out_shape=(
            jax.ShapeDtypeStruct((n, d_out), jnp.float32),   # unpadded z
            jax.ShapeDtypeStruct((1, 1), jnp.float32),
            jax.ShapeDtypeStruct((1, 1), jnp.float32),
        ),
        grid_spec=pltpu.PrefetchScalarGridSpec(
            num_scalar_prefetch=0,
            grid=grid,
            in_specs=[
                pl.BlockSpec((tile_n, d_in), lambda i: (i, 0)),   # x tile (bf16)
                pl.BlockSpec((d_in, hid_p), lambda i: (0, 0)),    # w1 (resident)
                pl.BlockSpec((1, hid_p), lambda i: (0, 0)),       # b1
                pl.BlockSpec((hid_p, out_p), lambda i: (0, 0)),   # w2
                pl.BlockSpec((1, out_p), lambda i: (0, 0)),       # b2
            ],
            out_specs=(
                pl.BlockSpec((tile_n, d_out), lambda i: (i, 0)),  # z (unpadded)
                pl.BlockSpec((1, 1), lambda i: (0, 0)),           # normloss
                pl.BlockSpec((1, 1), lambda i: (0, 0)),           # stdloss
            ),
            scratch_shapes=[
                pltpu.VMEM((1, out_p), jnp.float32),   # true_mean
                pltpu.VMEM((1, 1), jnp.float32),       # sum_j std(true_z[:, j])
                pltpu.VMEM((1, 1), jnp.float32),       # sum (||z||-1)^2
                pltpu.VMEM((1, out_p), jnp.float32),   # sum of unit rows (random)
            ],
        ),
        compiler_params=pltpu.CompilerParams(
            # Accumulators + tile-0 true-block stats keep the batch axis
            # sequential.  TODO(synk): per-core partial accumulators + tiny
            # combine would unlock "parallel" across v7x's two TensorCores.
            dimension_semantics=("arbitrary",),
            vmem_limit_bytes=int(vmem_limit),
        ),
        cost_estimate=pl.CostEstimate(
            flops=flops, transcendentals=n + out_p + 4,
            bytes_accessed=bytes_accessed),
    )(xb, w1p, b1p, w2p, b2p)

    return normloss[0, 0], stdloss[0, 0], z


def _reference_forward(x, w1, b1, w2, b2, *, same, normalize=100.0, margin=1.0):
    # Pure-JAX mirror of the kernel numerics: bf16 MXU operands + f32
    # accumulation for the encoder (intentional mixed-precision choice), all
    # loss math in f32 — semantics otherwise identical to StyleDisperser.forward.
    h = jnp.maximum(
        jnp.dot(x.astype(jnp.bfloat16), w1.astype(jnp.bfloat16),
                preferred_element_type=jnp.float32) + b1, 0.0)
    z = jnp.dot(h.astype(jnp.bfloat16), w2.astype(jnp.bfloat16),
                preferred_element_type=jnp.float32) + b2
    row_norm = jnp.linalg.norm(z, axis=1)
    normloss = normalize * jnp.mean((row_norm - 1.0) ** 2)
    true_z, random_z = z[:same], z[same:]
    true_mean = jnp.mean(true_z, axis=0)
    true_std = jnp.sum(jnp.std(true_z, axis=0, ddof=1))
    cos = (random_z @ true_mean) / jnp.linalg.norm(random_z, axis=1) / jnp.linalg.norm(true_mean)
    stdloss = true_std - jnp.mean(cos) + margin
    return normloss, stdloss, z


if __name__ == "__main__":
    # Small, deterministic problem consistent with the module:
    #   N = 256 samples, first `same` = 32 are the "true" style (module default),
    #   input_size = 32, hidden_size = 64, output_size = 16.
    # tile_n = 128 -> a 2-step batch grid, exercising the tiled accumulation
    # path (mixed true/random tile 0 + random-only tile 1).
    N, SAME = 256, 32
    INPUT_SIZE, HIDDEN_SIZE, OUTPUT_SIZE = 32, 64, 16

    key = jax.random.PRNGKey(0)
    kx, kw1, kb1, kw2, kb2 = jax.random.split(key, 5)

    x = jax.random.normal(kx, (N, INPUT_SIZE), dtype=jnp.float32)
    w1 = 0.1 * jax.random.normal(kw1, (INPUT_SIZE, HIDDEN_SIZE), dtype=jnp.float32)
    b1 = 0.01 * jax.random.normal(kb1, (HIDDEN_SIZE,), dtype=jnp.float32)
    w2 = 0.1 * jax.random.normal(kw2, (HIDDEN_SIZE, OUTPUT_SIZE), dtype=jnp.float32)
    b2 = 0.01 * jax.random.normal(kb2, (OUTPUT_SIZE,), dtype=jnp.float32)

    normloss, stdloss, z = style_disperser_forward(
        x, w1, b1, w2, b2, same=SAME, normalize=100.0, margin=1.0, tile_n=128)
    jax.block_until_ready((normloss, stdloss, z))

    # Sanity check against a pure-JAX reference of the same math.
    ref_norm, ref_std, ref_z = _reference_forward(
        x, w1, b1, w2, b2, same=SAME, normalize=100.0, margin=1.0)
    np.testing.assert_allclose(np.asarray(z), np.asarray(ref_z), rtol=5e-3, atol=5e-3)
    np.testing.assert_allclose(float(normloss), float(ref_norm), rtol=5e-3, atol=5e-3)
    np.testing.assert_allclose(float(stdloss), float(ref_std), rtol=5e-3, atol=5e-3)

    print("KERNEL_OK")
</pallas_src>

<mosaic_0001>
module attributes {stable_mosaic.version = 11 : i64} {
  func.func @_style_disperser_kernel(%arg0: i32, %arg1: memref<128x32xbf16, #tpu.memory_space<vmem>>, %arg2: memref<32x128xbf16, #tpu.memory_space<vmem>>, %arg3: memref<1x128xf32, #tpu.memory_space<vmem>>, %arg4: memref<128x128xbf16, #tpu.memory_space<vmem>>, %arg5: memref<1x128xf32, #tpu.memory_space<vmem>>, %arg6: memref<128x16xf32, #tpu.memory_space<vmem>>, %arg7: memref<1x1xf32, #tpu.memory_space<vmem>>, %arg8: memref<1x1xf32, #tpu.memory_space<vmem>>, %arg9: memref<1x128xf32, #tpu.memory_space<vmem>>, %arg10: memref<1x1xf32, #tpu.memory_space<vmem>>, %arg11: memref<1x1xf32, #tpu.memory_space<vmem>>, %arg12: memref<1x128xf32, #tpu.memory_space<vmem>>) attributes {dimension_semantics = [#tpu.dimension_semantics<arbitrary>], iteration_bounds = array<i64: 2>, scalar_prefetch = 0 : i64, scratch_operands = 4 : i64, tpu.core_type = #tpu.core_type<tc>, window_params = [{transform_indices = @transform_0, window_bounds = array<i64: 128, 32>}, {pipeline_mode = #tpu.pipeline_mode<synchronous>, transform_indices = @transform_1, window_bounds = array<i64: 32, 128>}, {pipeline_mode = #tpu.pipeline_mode<synchronous>, transform_indices = @transform_2, window_bounds = array<i64: 1, 128>}, {pipeline_mode = #tpu.pipeline_mode<synchronous>, transform_indices = @transform_3, window_bounds = array<i64: 128, 128>}, {pipeline_mode = #tpu.pipeline_mode<synchronous>, transform_indices = @transform_4, window_bounds = array<i64: 1, 128>}, {transform_indices = @transform_5, window_bounds = array<i64: 128, 16>}, {pipeline_mode = #tpu.pipeline_mode<synchronous>, transform_indices = @transform_6, window_bounds = array<i64: 1, 1>}, {pipeline_mode = #tpu.pipeline_mode<synchronous>, transform_indices = @transform_7, window_bounds = array<i64: 1, 1>}]} {
    %c0 = arith.constant 0 : index
    %c0_0 = arith.constant 0 : index
    %0 = vector.load %arg1[%c0, %c0_0] : memref<128x32xbf16, #tpu.memory_space<vmem>>, vector<128x32xbf16>
    %c0_1 = arith.constant 0 : index
    %c0_2 = arith.constant 0 : index
    %1 = vector.load %arg2[%c0_1, %c0_2] : memref<32x128xbf16, #tpu.memory_space<vmem>>, vector<32x128xbf16>
    %cst = arith.constant dense<0.000000e+00> : vector<128x128xf32>
    %2 = tpu.matmul %0, %1, %cst {dimension_numbers = #tpu.dot_dimension_numbers<[1], [0], [0], [1], [0, 0, 1, 1], [], []>} : vector<128x32xbf16>, vector<32x128xbf16>, vector<128x128xf32> -> vector<128x128xf32>
    %c0_3 = arith.constant 0 : index
    %c0_4 = arith.constant 0 : index
    %3 = vector.load %arg3[%c0_3, %c0_4] : memref<1x128xf32, #tpu.memory_space<vmem>>, vector<1x128xf32>
    %4 = vector.broadcast %3 : vector<1x128xf32> to vector<128x128xf32>
    %5 = arith.addf %2, %4 : vector<128x128xf32>
    %cst_5 = arith.constant 0.000000e+00 : f32
    %6 = vector.broadcast %cst_5 : f32 to vector<128x128xf32>
    %7 = arith.maximumf %5, %6 : vector<128x128xf32>
    %8 = arith.truncf %7 : vector<128x128xf32> to vector<128x128xbf16>
    %c0_6 = arith.constant 0 : index
    %c0_7 = arith.constant 0 : index
    %9 = vector.load %arg4[%c0_6, %c0_7] : memref<128x128xbf16, #tpu.memory_space<vmem>>, vector<128x128xbf16>
    %cst_8 = arith.constant dense<0.000000e+00> : vector<128x128xf32>
    %10 = tpu.matmul %8, %9, %cst_8 {dimension_numbers = #tpu.dot_dimension_numbers<[1], [0], [0], [1], [0, 0, 1, 1], [], []>} : vector<128x128xbf16>, vector<128x128xbf16>, vector<128x128xf32> -> vector<128x128xf32>
    %c0_9 = arith.constant 0 : index
    %c0_10 = arith.constant 0 : index
    %11 = vector.load %arg5[%c0_9, %c0_10] : memref<1x128xf32, #tpu.memory_space<vmem>>, vector<1x128xf32>
    %12 = vector.broadcast %11 : vector<1x128xf32> to vector<128x128xf32>
    %13 = arith.addf %10, %12 : vector<128x128xf32>
    %14 = vector.extract_strided_slice %13 {offsets = [0, 0], sizes = [128, 16], strides = [1, 1]} : vector<128x128xf32> to vector<128x16xf32>
    %c0_11 = arith.constant 0 : index
    %c0_12 = arith.constant 0 : index
    %15 = vector.load %arg6[%c0_11, %c0_12] : memref<128x16xf32, #tpu.memory_space<vmem>>, vector<128x16xf32>
    tpu.vector_store %arg6[%c0_11, %c0_12], %14 {strides = array<i32>} : memref<128x16xf32, #tpu.memory_space<vmem>>, vector<128x16xf32>,
    %16 = arith.mulf %13, %13 : vector<128x128xf32>
    %cst_13 = arith.constant dense<0.000000e+00> : vector<128xf32>
    %17 = vector.multi_reduction <add>, %16, %cst_13 [1] : vector<128x128xf32> to vector<128xf32>
    %18 = vector.shape_cast %17 : vector<128xf32> to vector<128x1xf32>
    %cst_14 = arith.constant 9.99999996E-13 : f32
    %19 = vector.broadcast %cst_14 : f32 to vector<128x1xf32>
    %20 = arith.addf %18, %19 : vector<128x1xf32>
    %21 = math.rsqrt %20 : vector<128x1xf32>
    %22 = arith.mulf %18, %21 : vector<128x1xf32>
    %23 = vector.broadcast %21 : vector<128x1xf32> to vector<128x128xf32>
    %24 = arith.mulf %13, %23 : vector<128x128xf32>
    %c0_i32 = arith.constant 0 : i32
    %25 = arith.cmpi eq, %arg0, %c0_i32 : i32
    %26 = arith.extui %25 : i1 to i32
    %c0_i32_15 = arith.constant 0 : i32
    %27 = arith.cmpi ne, %26, %c0_i32_15 : i32
    scf.if %27 {
      %46 = tpu.iota {dimensions = array<i32: 0>} : vector<128x1xi32>
      %c32_i32 = arith.constant 32 : i32
      %47 = vector.broadcast %c32_i32 : i32 to vector<128x1xi32>
      %48 = arith.cmpi slt, %46, %47 : vector<128x1xi32>
      %49 = arith.extui %48 : vector<128x1xi1> to vector<128x1xi32>
      %50 = arith.sitofp %49 : vector<128x1xi32> to vector<128x1xf32>
      %51 = vector.broadcast %50 : vector<128x1xf32> to vector<128x128xf32>
      %52 = arith.mulf %13, %51 : vector<128x128xf32>
      %cst_29 = arith.constant dense<0.000000e+00> : vector<128xf32>
      %53 = vector.multi_reduction <add>, %52, %cst_29 [0] : vector<128x128xf32> to vector<128xf32>
      %54 = vector.shape_cast %53 : vector<128xf32> to vector<1x128xf32>
      %cst_30 = arith.constant 3.125000e-02 : f32
      %55 = vector.broadcast %cst_30 : f32 to vector<1x128xf32>
      %56 = arith.mulf %54, %55 : vector<1x128xf32>
      %57 = vector.broadcast %56 : vector<1x128xf32> to vector<128x128xf32>
      %58 = arith.subf %13, %57 : vector<128x128xf32>
      %59 = vector.broadcast %50 : vector<128x1xf32> to vector<128x128xf32>
      %60 = arith.mulf %58, %59 : vector<128x128xf32>
      %61 = arith.mulf %60, %60 : vector<128x128xf32>
      %cst_31 = arith.constant dense<0.000000e+00> : vector<128xf32>
      %62 = vector.multi_reduction <add>, %61, %cst_31 [0] : vector<128x128xf32> to vector<128xf32>
      %63 = vector.shape_cast %62 : vector<128xf32> to vector<1x128xf32>
      %cst_32 = arith.constant 0.0322580636 : f32
      %64 = vector.broadcast %cst_32 : f32 to vector<1x128xf32>
      %65 = arith.mulf %63, %64 : vector<1x128xf32>
      %c0_33 = arith.constant 0 : index
      %c0_34 = arith.constant 0 : index
      %66 = vector.load %arg9[%c0_33, %c0_34] : memref<1x128xf32, #tpu.memory_space<vmem>>, vector<1x128xf32>
      tpu.vector_store %arg9[%c0_33, %c0_34], %56 {strides = array<i32>} : memref<1x128xf32, #tpu.memory_space<vmem>>, vector<1x128xf32>,
      %67 = math.sqrt %65 : vector<1x128xf32>
      %cst_35 = arith.constant dense<0.000000e+00> : vector<1xf32>
      %68 = vector.multi_reduction <add>, %67, %cst_35 [1] : vector<1x128xf32> to vector<1xf32>
      %69 = vector.shape_cast %68 : vector<1xf32> to vector<1x1xf32>
      %cst_36 = arith.constant dense<0.000000e+00> : vector<1xf32>
      %70 = vector.multi_reduction <add>, %69, %cst_36 [0] : vector<1x1xf32> to vector<1xf32>
      %71 = vector.shape_cast %70 : vector<1xf32> to vector<1x1xf32>
      %c0_37 = arith.constant 0 : index
      %c0_38 = arith.constant 0 : index
      %72 = vector.load %arg10[%c0_37, %c0_38] : memref<1x1xf32, #tpu.memory_space<vmem>>, vector<1x1xf32>
      tpu.vector_store %arg10[%c0_37, %c0_38], %71 {strides = array<i32>} : memref<1x1xf32, #tpu.memory_space<vmem>>, vector<1x1xf32>,
      %cst_39 = arith.constant 0.000000e+00 : f32
      %73 = vector.broadcast %cst_39 : f32 to vector<1x1xf32>
      %c0_40 = arith.constant 0 : index
      %c0_41 = arith.constant 0 : index
      %74 = vector.load %arg11[%c0_40, %c0_41] : memref<1x1xf32, #tpu.memory_space<vmem>>, vector<1x1xf32>
      tpu.vector_store %arg11[%c0_40, %c0_41], %73 {strides = array<i32>} : memref<1x1xf32, #tpu.memory_space<vmem>>, vector<1x1xf32>,
      %75 = vector.broadcast %50 : vector<128x1xf32> to vector<128x128xf32>
      %76 = arith.mulf %24, %75 : vector<128x128xf32>
      %cst_42 = arith.constant dense<0.000000e+00> : vector<128xf32>
      %77 = vector.multi_reduction <add>, %76, %cst_42 [0] : vector<128x128xf32> to vector<128xf32>
      %78 = vector.shape_cast %77 : vector<128xf32> to vector<1x128xf32>
      %cst_43 = arith.constant 0.000000e+00 : f32
      %79 = vector.broadcast %cst_43 : f32 to vector<1x128xf32>
      %80 = arith.subf %79, %78 : vector<1x128xf32>
      %c0_44 = arith.constant 0 : index
      %c0_45 = arith.constant 0 : index
      %81 = vector.load %arg12[%c0_44, %c0_45] : memref<1x128xf32, #tpu.memory_space<vmem>>, vector<1x128xf32>
      tpu.vector_store %arg12[%c0_44, %c0_45], %80 {strides = array<i32>} : memref<1x128xf32, #tpu.memory_space<vmem>>, vector<1x128xf32>,
    } else {
    }
    %c0_16 = arith.constant 0 : index
    %c0_17 = arith.constant 0 : index
    %28 = vector.load %arg11[%c0_16, %c0_17] : memref<1x1xf32, #tpu.memory_space<vmem>>, vector<1x1xf32>
    %cst_18 = arith.constant 1.000000e+00 : f32
    %29 = vector.broadcast %cst_18 : f32 to vector<128x1xf32>
    %30 = arith.subf %22, %29 : vector<128x1xf32>
    %31 = arith.mulf %30, %30 : vector<128x1xf32>
    %cst_19 = arith.constant dense<0.000000e+00> : vector<128xf32>
    %32 = vector.multi_reduction <add>, %31, %cst_19 [1] : vector<128x1xf32> to vector<128xf32>
    %33 = vector.shape_cast %32 : vector<128xf32> to vector<128x1xf32>
    %cst_20 = arith.constant dense<0.000000e+00> : vector<1xf32>
    %34 = vector.multi_reduction <add>, %33, %cst_20 [0] : vector<128x1xf32> to vector<1xf32>
    %35 = vector.shape_cast %34 : vector<1xf32> to vector<1x1xf32>
    %36 = arith.addf %28, %35 : vector<1x1xf32>
    %c0_21 = arith.constant 0 : index
    %c0_22 = arith.constant 0 : index
    %37 = vector.load %arg11[%c0_21, %c0_22] : memref<1x1xf32, #tpu.memory_space<vmem>>, vector<1x1xf32>
    tpu.vector_store %arg11[%c0_21, %c0_22], %36 {strides = array<i32>} : memref<1x1xf32, #tpu.memory_space<vmem>>, vector<1x1xf32>,
    %c0_23 = arith.constant 0 : index
    %c0_24 = arith.constant 0 : index
    %38 = vector.load %arg12[%c0_23, %c0_24] : memref<1x128xf32, #tpu.memory_space<vmem>>, vector<1x128xf32>
    %cst_25 = arith.constant dense<0.000000e+00> : vector<128xf32>
    %39 = vector.multi_reduction <add>, %24, %cst_25 [0] : vector<128x128xf32> to vector<128xf32>
    %40 = vector.shape_cast %39 : vector<128xf32> to vector<1x128xf32>
    %41 = arith.addf %38, %40 : vector<1x128xf32>
    %c0_26 = arith.constant 0 : index
    %c0_27 = arith.constant 0 : index
    %42 = vector.load %arg12[%c0_26, %c0_27] : memref<1x128xf32, #tpu.memory_space<vmem>>, vector<1x128xf32>
    tpu.vector_store %arg12[%c0_26, %c0_27], %41 {strides = array<i32>} : memref<1x128xf32, #tpu.memory_space<vmem>>, vector<1x128xf32>,
    %c1_i32 = arith.constant 1 : i32
    %43 = arith.cmpi eq, %arg0, %c1_i32 : i32
    %44 = arith.extui %43 : i1 to i32
    %c0_i32_28 = arith.constant 0 : i32
    %45 = arith.cmpi ne, %44, %c0_i32_28 : i32
    scf.if %45 {
      %c0_29 = arith.constant 0 : index
      %c0_30 = arith.constant 0 : index
      %46 = vector.load %arg11[%c0_29, %c0_30] : memref<1x1xf32, #tpu.memory_space<vmem>>, vector<1x1xf32>
      %cst_31 = arith.constant 1.000000e+02 : f32
      %47 = vector.broadcast %cst_31 : f32 to vector<1x1xf32>
      %48 = arith.mulf %47, %46 : vector<1x1xf32>
      %cst_32 = arith.constant 3.906250e-03 : f32
      %49 = vector.broadcast %cst_32 : f32 to vector<1x1xf32>
      %50 = arith.mulf %48, %49 : vector<1x1xf32>
      %c0_33 = arith.constant 0 : index
      %c0_34 = arith.constant 0 : index
      %51 = vector.load %arg7[%c0_33, %c0_34] : memref<1x1xf32, #tpu.memory_space<vmem>>, vector<1x1xf32>
      tpu.vector_store %arg7[%c0_33, %c0_34], %50 {strides = array<i32>} : memref<1x1xf32, #tpu.memory_space<vmem>>, vector<1x1xf32>,
      %c0_35 = arith.constant 0 : index
      %c0_36 = arith.constant 0 : index
      %52 = vector.load %arg9[%c0_35, %c0_36] : memref<1x128xf32, #tpu.memory_space<vmem>>, vector<1x128xf32>
      %53 = arith.mulf %52, %52 : vector<1x128xf32>
      %cst_37 = arith.constant dense<0.000000e+00> : vector<1xf32>
      %54 = vector.multi_reduction <add>, %53, %cst_37 [1] : vector<1x128xf32> to vector<1xf32>
      %55 = vector.shape_cast %54 : vector<1xf32> to vector<1x1xf32>
      %cst_38 = arith.constant dense<0.000000e+00> : vector<1xf32>
      %56 = vector.multi_reduction <add>, %55, %cst_38 [0] : vector<1x1xf32> to vector<1xf32>
      %57 = vector.shape_cast %56 : vector<1xf32> to vector<1x1xf32>
      %cst_39 = arith.constant 9.99999996E-13 : f32
      %58 = vector.broadcast %cst_39 : f32 to vector<1x1xf32>
      %59 = arith.addf %57, %58 : vector<1x1xf32>
      %60 = math.rsqrt %59 : vector<1x1xf32>
      %c0_40 = arith.constant 0 : index
      %c0_41 = arith.constant 0 : index
      %61 = vector.load %arg12[%c0_40, %c0_41] : memref<1x128xf32, #tpu.memory_space<vmem>>, vector<1x128xf32>
      %62 = arith.mulf %52, %61 : vector<1x128xf32>
      %cst_42 = arith.constant dense<0.000000e+00> : vector<1xf32>
      %63 = vector.multi_reduction <add>, %62, %cst_42 [1] : vector<1x128xf32> to vector<1xf32>
      %64 = vector.shape_cast %63 : vector<1xf32> to vector<1x1xf32>
      %cst_43 = arith.constant dense<0.000000e+00> : vector<1xf32>
      %65 = vector.multi_reduction <add>, %64, %cst_43 [0] : vector<1x1xf32> to vector<1xf32>
      %66 = vector.shape_cast %65 : vector<1xf32> to vector<1x1xf32>
      %67 = arith.mulf %66, %60 : vector<1x1xf32>
      %cst_44 = arith.constant 0.00446428591 : f32
      %68 = vector.broadcast %cst_44 : f32 to vector<1x1xf32>
      %69 = arith.mulf %67, %68 : vector<1x1xf32>
      %c0_45 = arith.constant 0 : index
      %c0_46 = arith.constant 0 : index
      %70 = vector.load %arg10[%c0_45, %c0_46] : memref<1x1xf32, #tpu.memory_space<vmem>>, vector<1x1xf32>
      %71 = arith.subf %70, %69 : vector<1x1xf32>
      %cst_47 = arith.constant 1.000000e+00 : f32
      %72 = vector.broadcast %cst_47 : f32 to vector<1x1xf32>
      %73 = arith.addf %71, %72 : vector<1x1xf32>
      %c0_48 = arith.constant 0 : index
      %c0_49 = arith.constant 0 : index
      %74 = vector.load %arg8[%c0_48, %c0_49] : memref<1x1xf32, #tpu.memory_space<vmem>>, vector<1x1xf32>
      tpu.vector_store %arg8[%c0_48, %c0_49], %73 {strides = array<i32>} : memref<1x1xf32, #tpu.memory_space<vmem>>, vector<1x1xf32>,
    } else {
    }
    return
  }
  func.func @transform_0(%arg0: i32) -> (i32, i32) {
    %c0_i32 = arith.constant 0 : i32
    %c0_i32_0 = arith.constant 0 : i32
    return %arg0, %c0_i32 : i32, i32
  }
  func.func @transform_1(%arg0: i32) -> (i32, i32) {
    %c0_i32 = arith.constant 0 : i32
    %c0_i32_0 = arith.constant 0 : i32
    %c0_i32_1 = arith.constant 0 : i32
    return %c0_i32, %c0_i32_0 : i32, i32
  }
  func.func @transform_2(%arg0: i32) -> (i32, i32) {
    %c0_i32 = arith.constant 0 : i32
    %c0_i32_0 = arith.constant 0 : i32
    %c0_i32_1 = arith.constant 0 : i32
    return %c0_i32, %c0_i32_0 : i32, i32
  }
  func.func @transform_3(%arg0: i32) -> (i32, i32) {
    %c0_i32 = arith.constant 0 : i32
    %c0_i32_0 = arith.constant 0 : i32
    %c0_i32_1 = arith.constant 0 : i32
    return %c0_i32, %c0_i32_0 : i32, i32
  }
  func.func @transform_4(%arg0: i32) -> (i32, i32) {
    %c0_i32 = arith.constant 0 : i32
    %c0_i32_0 = arith.constant 0 : i32
    %c0_i32_1 = arith.constant 0 : i32
    return %c0_i32, %c0_i32_0 : i32, i32
  }
  func.func @transform_5(%arg0: i32) -> (i32, i32) {
    %c0_i32 = arith.constant 0 : i32
    %c0_i32_0 = arith.constant 0 : i32
    return %arg0, %c0_i32 : i32, i32
  }
  func.func @transform_6(%arg0: i32) -> (i32, i32) {
    %c0_i32 = arith.constant 0 : i32
    %c0_i32_0 = arith.constant 0 : i32
    %c0_i32_1 = arith.constant 0 : i32
    return %c0_i32, %c0_i32_0 : i32, i32
  }
  func.func @transform_7(%arg0: i32) -> (i32, i32) {
    %c0_i32 = arith.constant 0 : i32
    %c0_i32_0 = arith.constant 0 : i32
    %c0_i32_1 = arith.constant 0 : i32
    return %c0_i32, %c0_i32_0 : i32, i32
  }
}

</mosaic_0001>

<bundles_post_ra>
// kernel: tpu_custom_call.1
= control target key start
LH: loop header
LB: loop body
LE: loop exit
PB: predicated region body
PF: predicated region fallthrough
CT: control target
= control target key end

     0   :  { %13 = vsyncpa [#allocation7], 0  ;;  %s2023_s0 = inlined_call_operand.vmem [shape: bf16[256,32], index: 0, kind: input, shape index: {}]   ;;  %s2024_s1 = inlined_call_operand.vmem [shape: bf16[32,128], index: 1, kind: input, shape index: {}]   ;;  %s2025_s2 = inlined_call_operand.vmem [shape: f32[1,128], index: 2, kind: input, shape index: {}]   ;;  %s2026_s3 = inlined_call_operand.vmem [shape: bf16[128,128], index: 3, kind: input, shape index: {}]   ;;  %s2027_s4 = inlined_call_operand.vmem [shape: f32[1,128], index: 4, kind: input, shape index: {}]   ;;  %s2028_s5 = inlined_call_operand.vmem [shape: f32[256,16], index: 5, kind: output, shape index: {0}]   ;;  %s2029_s6 = inlined_call_operand.hbm [shape: f32[1,1], index: 6, kind: output, shape index: {1}]   ;;  %s2030_s7 = inlined_call_operand.hbm [shape: f32[1,1], index: 7, kind: output, shape index: {2}]  }
   0x1   :  { %14 = vsyncpa [#allocation9], 0  ;;  %s1603_s24 = smov 0  }
   0x2 LB: > { %s1609_s25 = sadd.s32 4294967295, %s1558_s24   ;;  %p1264_p0 = scmp.ge.s32.totalorder %s1558_s24, 1  ;;  %s1558_s24 = sphi %s1603_s24, %s20_s24  }
   0x3   : > { %p235_p1 = scmp.lt.s32.totalorder %s1558_s24, 3 }
   0x5   : > { %p236_p2 = pnand %p1264_p0, %p235_p1 }
   0x7   : > { %239 = sbr.rel (%p236_p2) target bundleno = 1146 (0x47a), region = 40 }
   0xe   : > { %v1438_v0 = vld [vmem:[%s2024_s1] sm:$0xff]   ;;  %s1265_s28 = sshll.u32 %s1609_s25, 4  ;;  %v1439_v1 = vld [vmem:[%s2024_s1 + $0x8] sm:$0xff]   ;;  %vm359_vm0 = vcmask 261120   ;;  %v1450_v4 = vld [vmem:[%s2026_s3 + $0x10] sm:$0xff]   ;;  %vm673_vm1 = vcmask 130048  }
   0xf   : > { %p268_p3 = scmp.lt.s32.totalorder %s1265_s28, 31  ;;  %1347 = vmatprep.subr.bf16.mxu0 %v1438_v0  ;;  %v1448_v2 = vld [vmem:[%s2026_s3] sm:$0xff]   ;;  %v1449_v3 = vld [vmem:[%s2026_s3 + $0x8] sm:$0xff]   ;;  %v1451_v8 = vld [vmem:[%s2026_s3 + $0x18] sm:$0xff]   ;;  %p1297_p4 = scmp.ne.s32.totalorder %s1609_s25, 0 }
  0x10   : > { %1348 = vmatpush3.bf16.msra.mxu0 %v1438_v0  ;;  %1399 = vmatprep.subr.bf16.mxu1 %v1448_v2  ;;  %v1452_v10 = vld [vmem:[%s2026_s3 + $0x20] sm:$0xff]   ;;  %v1453_v12 = vld [vmem:[%s2026_s3 + $0x28] sm:$0xff]   ;;  %v1454_v16 = vld [vmem:[%s2026_s3 + $0x30] sm:$0xff]   ;;  %vm990_vm4 = vcmask (!%p1297_p4), 0  }
  0x11   : > { %s2040_s28 = smov (!%p268_p3, %s1265_s28), 31  ;;  %1349 = vmatprep.subr.bf16.mxu0 %v1439_v1  ;;  %1407 = vmatpush3.bf16.msra.mxu1 %v1448_v2  ;;  %v1455_v17 = vld [vmem:[%s2026_s3 + $0x38] sm:$0xff]   ;;  %v1269_v18 = vld [vmem:[%s2025_s2] ss:$0 sm:$0xff] }
  0x12   : > { %s1266_s12 = sshll.u32 %s2040_s28, 2  ;;  %1400 = vmatprep.subr.bf16.mxu1 %v1449_v3  ;;  %s1268_s10 = sshll.u32 %s2040_s28, 3 }
  0x13   : > { %s1632_s15 = scalar_lea.vmem %s2023_s0, %s1266_s12 }
  0x14   : > { %1350 = vmatpush3.bf16.msra.mxu0 %v1439_v1  ;;  %v1440_v5 = vld [vmem:[%s1632_s15] sm:$0xff]   ;;  %v1441_v6 = vld [vmem:[%s1632_s15 + $0x8] sm:$0xff]   ;;  %v1442_v7 = vld [vmem:[%s1632_s15 + $0x10] sm:$0xff]  }
  0x15   : > { %1367 = vmatprep.subr.bf16.mxu0 %v1448_v2  ;;  %1351 = vmatprep.mubr.msk.bf16.mxu0 %vm359_vm0, %v1440_v5  ;;  %v1443_v9 = vld [vmem:[%s1632_s15 + $0x18] sm:$0xff]   ;;  %v1444_v11 = vld [vmem:[%s1632_s15 + $0x20] sm:$0xff]   ;;  %v1445_v13 = vld [vmem:[%s1632_s15 + $0x28] sm:$0xff]  }
  0x16   : > { %1408 = vmatpush3.bf16.msra.mxu1 %v1449_v3  ;;  %v1446_v14 = vld [vmem:[%s1632_s15 + $0x30] sm:$0xff]   ;;  %v1447_v15 = vld [vmem:[%s1632_s15 + $0x38] sm:$0xff]   ;;  %s1680_s15 = scalar_lea.vmem %s2028_s5, %s1268_s10 }
  0x17   : > { %1352 = vmatmul.mubr.msk.bf16.vlgmr.msra.gmra.mrb[0].mxu0 %vm359_vm0, %v1441_v6  ;;  %1401 = vmatprep.subr.bf16.mxu1 %v1450_v4 }
  0x18   : > { %1355 = vmatprep.mubr.msk.bf16.mxu0 %vm359_vm0, %v1442_v7  ;;  %1368 = vmatpush3.bf16.msra.mxu0 %v1448_v2 }
  0x19   : > { %1369 = vmatprep.subr.bf16.mxu0 %v1449_v3 }
  0x1a   : > { %1409 = vmatpush3.bf16.msra.mxu1 %v1450_v4 }
  0x1b   : > { %1402 = vmatprep.subr.bf16.mxu1 %v1451_v8 }
  0x1c   : > { %1370 = vmatpush3.bf16.msra.mxu0 %v1449_v3 }
  0x1d   : > { %1371 = vmatprep.subr.bf16.mxu0 %v1450_v4 }
  0x1e   : > { %1410 = vmatpush3.bf16.msra.mxu1 %v1451_v8 }
  0x1f   : > { %1356 = vmatmul.mubr.msk.bf16.gmra.mrb[4].mxu0 %vm359_vm0, %v1443_v9  ;;  %1403 = vmatprep.subr.bf16.mxu1 %v1452_v10 }
  0x20   : > { %1359 = vmatprep.mubr.msk.bf16.mxu0 %vm359_vm0, %v1444_v11  ;;  %1372 = vmatpush3.bf16.msra.mxu0 %v1450_v4  ;;  %v1675_v11 = vld [vmem:[%s2027_s4] ss:$0 sm:$0xff] }
  0x21   : > { %1373 = vmatprep.subr.bf16.mxu0 %v1451_v8 }
  0x22   : > { %1411 = vmatpush3.bf16.msra.mxu1 %v1452_v10 }
  0x23   : > { %1404 = vmatprep.subr.bf16.mxu1 %v1453_v12 }
  0x24   : > { %1374 = vmatpush3.bf16.msra.mxu0 %v1451_v8 }
  0x25   : > { %1375 = vmatprep.subr.bf16.mxu0 %v1452_v10 }
  0x26   : > { %1412 = vmatpush3.bf16.msra.mxu1 %v1453_v12 }
  0x27   : > { %1360 = vmatmul.mubr.msk.bf16.gmra.mrb[8].mxu0 %vm359_vm0, %v1445_v13  ;;  %1405 = vmatprep.subr.bf16.mxu1 %v1454_v16 }
  0x28   : > { %1363 = vmatprep.mubr.msk.bf16.mxu0 %vm359_vm0, %v1446_v14  ;;  %1376 = vmatpush3.bf16.msra.mxu0 %v1452_v10 }
  0x29   : > { %1377 = vmatprep.subr.bf16.mxu0 %v1453_v12 }
  0x2a   : > { %1413 = vmatpush3.bf16.msra.mxu1 %v1454_v16 }
  0x2b   : > { %1406 = vmatprep.subr.bf16.mxu1 %v1455_v17 }
  0x2c   : > { %1378 = vmatpush3.bf16.msra.mxu0 %v1453_v12 }
  0x2d   : > { %1379 = vmatprep.subr.bf16.mxu0 %v1454_v16 }
  0x2e   : > { %1414 = vmatpush3.bf16.msra.mxu1 %v1455_v17 }
  0x2f   : > { %1364 = vmatmul.mubr.msk.bf16.gmra.mrb[12].mxu0 %vm359_vm0, %v1447_v15 }
  0x30   : > { %1380 = vmatpush3.bf16.msra.mxu0 %v1454_v16 }
  0x31   : > { %1381 = vmatprep.subr.bf16.mxu0 %v1455_v17 }
  0x34   : > { %1382 = vmatpush3.bf16.msra.mxu0 %v1455_v17 }
  0xea   : > { %v1353_v19 = vpop.f32.mrb[0].mxu0 }
  0xeb   : > { %v427_v20 = vadd.f32 %v1353_v19, %v1269_v18  ;;  %v418_v21 = vpop.f32.mrb[1].mxu0 }
  0xec   : > { %v419_v22 = vadd.f32 %v1269_v18, %v418_v21  ;;  %v1354_v23 = vpop.f32.mrb[2].mxu0 }
  0xed   : > { %v430_v24 = vadd.f32 %v1354_v23, %v1269_v18  ;;  %v421_v25 = vpop.f32.mrb[3].mxu0  ;;  %v483_v27 = vmax.f32 %v427_v20, 0.0 }
  0xee   : > { %v422_v26 = vadd.f32 %v1269_v18, %v421_v25  ;;  %v481_v29 = vmax.f32 %v419_v22, 0.0 }
  0xef   : > { %v484_v28 = vmax.f32 %v430_v24, 0.0 }
  0xf0   : > { %v482_v30 = vmax.f32 %v422_v26, 0.0 }
  0xf1   : > { %v498_v31 = vpack.c.bf16 %v484_v28, %v483_v27 }
  0xf2   : > { %v497_v32 = vpack.c.bf16 %v482_v30, %v481_v29  ;;  %v1357_v33 = vpop.f32.mrb[4].mxu0 }
  0xf3   : > { %v443_v34 = vadd.f32 %v1357_v33, %v1269_v18  ;;  %v434_v35 = vpop.f32.mrb[5].mxu0 }
  0xf4   : > { %v435_v36 = vadd.f32 %v1269_v18, %v434_v35  ;;  %v1358_v37 = vpop.f32.mrb[6].mxu0  ;;  %1383 = vmatprep.mubr.bf16.mxu0 %v497_v32 }
  0xf5   : > { %v446_v38 = vadd.f32 %v1358_v37, %v1269_v18  ;;  %v437_v39 = vpop.f32.mrb[7].mxu0  ;;  %1384 = vmatmul.mubr.bf16.vlgmr.msra.gmra.mrb[16].mxu0 %v498_v31  ;;  %v487_v41 = vmax.f32 %v443_v34, 0.0 }
  0xf6   : > { %v438_v40 = vadd.f32 %v1269_v18, %v437_v39  ;;  %v485_v43 = vmax.f32 %v435_v36, 0.0 }
  0xf7   : > { %v488_v42 = vmax.f32 %v446_v38, 0.0 }
  0xf8   : > { %v486_v44 = vmax.f32 %v438_v40, 0.0 }
  0xf9   : > { %v500_v45 = vpack.c.bf16 %v488_v42, %v487_v41 }
  0xfa   : > { %v1361_v46 = vpop.f32.mrb[8].mxu0  ;;  %v499_v47 = vpack.c.bf16 %v486_v44, %v485_v43 }
  0xfb   : > { %v459_v48 = vadd.f32 %v1361_v46, %v1269_v18  ;;  %v450_v49 = vpop.f32.mrb[9].mxu0 }
  0xfc   : > { %v451_v50 = vadd.f32 %v1269_v18, %v450_v49  ;;  %v1362_v51 = vpop.f32.mrb[10].mxu0  ;;  %1387 = vmatprep.mubr.bf16.mxu1 %v499_v47 }
  0xfd   : > { %v462_v52 = vadd.f32 %v1362_v51, %v1269_v18  ;;  %v453_v53 = vpop.f32.mrb[11].mxu0  ;;  %1388 = vmatmul.mubr.bf16.vlgmr.msra.gmra.mrb[0].mxu1 %v500_v45  ;;  %v491_v55 = vmax.f32 %v459_v48, 0.0 }
  0xfe   : > { %v454_v54 = vadd.f32 %v1269_v18, %v453_v53  ;;  %v489_v57 = vmax.f32 %v451_v50, 0.0 }
  0xff   : > { %v492_v56 = vmax.f32 %v462_v52, 0.0 }
 0x100   : > { %v490_v58 = vmax.f32 %v454_v54, 0.0 }
 0x101   : > { %v502_v59 = vpack.c.bf16 %v492_v56, %v491_v55 }
 0x102   : > { %v501_v60 = vpack.c.bf16 %v490_v58, %v489_v57  ;;  %v1365_v61 = vpop.f32.mrb[12].mxu0 }
 0x103   : > { %v475_v62 = vadd.f32 %v1365_v61, %v1269_v18  ;;  %v466_v63 = vpop.f32.mrb[13].mxu0 }
 0x104   : > { %v467_v0 = vadd.f32 %v1269_v18, %v466_v63  ;;  %v1366_v1 = vpop.f32.mrb[14].mxu0  ;;  %1391 = vmatprep.mubr.bf16.mxu1 %v501_v60 }
 0x105   : > { %v478_v2 = vadd.f32 %v1366_v1, %v1269_v18  ;;  %v469_v3 = vpop.f32.mrb[15].mxu0  ;;  %1392 = vmatmul.mubr.bf16.gmra.mrb[4].mxu1 %v502_v59  ;;  %v495_v5 = vmax.f32 %v475_v62, 0.0 }
 0x106   : > { %v470_v4 = vadd.f32 %v1269_v18, %v469_v3  ;;  %v493_v7 = vmax.f32 %v467_v0, 0.0 }
 0x107   : > { %v496_v6 = vmax.f32 %v478_v2, 0.0 }
 0x108   : > { %v494_v8 = vmax.f32 %v470_v4, 0.0 }
 0x109   : > { %v504_v9 = vpack.c.bf16 %v496_v6, %v495_v5 }
 0x10a   : > { %v503_v10 = vpack.c.bf16 %v494_v8, %v493_v7 }
 0x10c   : > { %1395 = vmatprep.mubr.bf16.mxu1 %v503_v10 }
 0x10d   : > { %1396 = vmatmul.mubr.bf16.gmra.mrb[8].mxu1 %v504_v9 }
 0x1c8   : > { %v1385_v12 = vpop.f32.mrb[16].mxu0 }
 0x1c9   : > { %v1683_v13 = vadd.f32 %v1385_v12, %v1675_v11  ;;  %v610_v14 = vpop.f32.mrb[17].mxu0 }
 0x1ca   : > { %v1686_v15 = vadd.f32 %v1675_v11, %v610_v14  ;;  %v1386_v16 = vpop.f32.mrb[18].mxu0 }
 0x1cb   : > { %676 = vst.msk [vmem:[%s1680_s15 + $0x10] sm:$0xff] %vm673_vm1, %v1683_v13  ;;  %v1692_v17 = vadd.f32 %v1386_v16, %v1675_v11  ;;  %v613_v18 = vpop.f32.mrb[19].mxu0  ;;  %v692_v19 = vmul.f32 %v1683_v13, %v1683_v13 }
 0x1cc   : > { %674 = vst.msk [vmem:[%s1680_s15] sm:$0xff] %vm673_vm1, %v1686_v15  ;;  %v1700_v20 = vadd.f32 %v1675_v11, %v613_v18  ;;  %v690_v21 = vmul.f32 %v1686_v15, %v1686_v15 }
 0x1cd   : > { %677 = vst.msk [vmem:[%s1680_s15 + $0x18] sm:$0xff] %vm673_vm1, %v1692_v17  ;;  %710 = vadd.xlane.f32.xlu1 %v692_v19  ;;  %v693_v22 = vmul.f32 %v1692_v17, %v1692_v17 }
 0x1ce   : > { %675 = vst.msk [vmem:[%s1680_s15 + $0x8] sm:$0xff] %vm673_vm1, %v1700_v20  ;;  %706 = vadd.xlane.f32.xlu0 %v690_v21  ;;  %v691_v24 = vmul.f32 %v1700_v20, %v1700_v20 }
 0x1d0   : > { %v1389_v23 = vpop.f32.mrb[0].mxu1 }
 0x1d1   : > { %v1715_v25 = vadd.f32 %v1389_v23, %v1675_v11  ;;  %v626_v26 = vpop.f32.mrb[1].mxu1  ;;  %712 = vadd.xlane.f32.xlu1 %v693_v22 }
 0x1d2   : > { %v1718_v27 = vadd.f32 %v1675_v11, %v626_v26  ;;  %v1390_v28 = vpop.f32.mrb[2].mxu1  ;;  %708 = vadd.xlane.f32.xlu0 %v691_v24 }
 0x1d3   : > { %680 = vst.msk [vmem:[%s1680_s15 + $0x30] sm:$0xff] %vm673_vm1, %v1715_v25  ;;  %v1724_v29 = vadd.f32 %v1390_v28, %v1675_v11  ;;  %v629_v30 = vpop.f32.mrb[3].mxu1  ;;  %v696_v31 = vmul.f32 %v1715_v25, %v1715_v25 }
 0x1d4   : > { %678 = vst.msk [vmem:[%s1680_s15 + $0x20] sm:$0xff] %vm673_vm1, %v1718_v27  ;;  %v1732_v32 = vadd.f32 %v1675_v11, %v629_v30  ;;  %v694_v35 = vmul.f32 %v1718_v27, %v1718_v27 }
 0x1d5   : > { %681 = vst.msk [vmem:[%s1680_s15 + $0x38] sm:$0xff] %vm673_vm1, %v1724_v29  ;;  %v697_v33 = vmul.f32 %v1724_v29, %v1724_v29 }
 0x1d6   : > { %679 = vst.msk [vmem:[%s1680_s15 + $0x28] sm:$0xff] %vm673_vm1, %v1732_v32  ;;  %718 = vadd.xlane.f32.xlu0 %v696_v31  ;;  %v695_v38 = vmul.f32 %v1732_v32, %v1732_v32 }
 0x1d7   : > { %720 = vadd.xlane.f32.xlu1 %v697_v33 }
 0x1d8   : > { %v1393_v34 = vpop.f32.mrb[4].mxu1 }
 0x1d9   : > { %v1745_v36 = vadd.f32 %v1393_v34, %v1675_v11  ;;  %v642_v37 = vpop.f32.mrb[5].mxu1 }
 0x1da   : > { %v1750_v39 = vadd.f32 %v1675_v11, %v642_v37  ;;  %v1394_v40 = vpop.f32.mrb[6].mxu1  ;;  %714 = vadd.xlane.f32.xlu0 %v694_v35 }
 0x1db   : > { %684 = vst.msk [vmem:[%s1680_s15 + $0x50] sm:$0xff] %vm673_vm1, %v1745_v36  ;;  %v1756_v41 = vadd.f32 %v1394_v40, %v1675_v11  ;;  %v645_v42 = vpop.f32.mrb[7].mxu1  ;;  %716 = vadd.xlane.f32.xlu1 %v695_v38  ;;  %v700_v43 = vmul.f32 %v1745_v36, %v1745_v36 }
 0x1dc   : > { %682 = vst.msk [vmem:[%s1680_s15 + $0x40] sm:$0xff] %vm673_vm1, %v1750_v39  ;;  %v1764_v44 = vadd.f32 %v1675_v11, %v645_v42  ;;  %v698_v47 = vmul.f32 %v1750_v39, %v1750_v39 }
 0x1dd   : > { %685 = vst.msk [vmem:[%s1680_s15 + $0x58] sm:$0xff] %vm673_vm1, %v1756_v41  ;;  %v701_v45 = vmul.f32 %v1756_v41, %v1756_v41 }
 0x1de   : > { %683 = vst.msk [vmem:[%s1680_s15 + $0x48] sm:$0xff] %vm673_vm1, %v1764_v44  ;;  %726 = vadd.xlane.f32.xlu0 %v700_v43  ;;  %v699_v50 = vmul.f32 %v1764_v44, %v1764_v44 }
 0x1df   : > { %728 = vadd.xlane.f32.xlu1 %v701_v45 }
 0x1e0   : > { %v1397_v46 = vpop.f32.mrb[8].mxu1 }
 0x1e1   : > { %v1777_v48 = vadd.f32 %v1397_v46, %v1675_v11  ;;  %v658_v49 = vpop.f32.mrb[9].mxu1 }
 0x1e2   : > { %v1782_v51 = vadd.f32 %v1675_v11, %v658_v49  ;;  %v1398_v52 = vpop.f32.mrb[10].mxu1  ;;  %722 = vadd.xlane.f32.xlu0 %v698_v47 }
 0x1e3   : > { %688 = vst.msk [vmem:[%s1680_s15 + $0x70] sm:$0xff] %vm673_vm1, %v1777_v48  ;;  %v1788_v53 = vadd.f32 %v1398_v52, %v1675_v11  ;;  %v661_v54 = vpop.f32.mrb[11].mxu1  ;;  %724 = vadd.xlane.f32.xlu1 %v699_v50  ;;  %v704_v58 = vmul.f32 %v1777_v48, %v1777_v48 }
 0x1e4   : > { %686 = vst.msk [vmem:[%s1680_s15 + $0x60] sm:$0xff] %vm673_vm1, %v1782_v51  ;;  %v1794_v55 = vadd.f32 %v1675_v11, %v661_v54  ;;  %v702_v56 = vmul.f32 %v1782_v51, %v1782_v51 }
 0x1e5   : > { %689 = vst.msk [vmem:[%s1680_s15 + $0x78] sm:$0xff] %vm673_vm1, %v1788_v53  ;;  %v705_v59 = vmul.f32 %v1788_v53, %v1788_v53 }
 0x1e6   : > { %687 = vst.msk [vmem:[%s1680_s15 + $0x68] sm:$0xff] %vm673_vm1, %v1794_v55  ;;  %730 = vadd.xlane.f32.xlu0 %v702_v56  ;;  %v703_v57 = vmul.f32 %v1794_v55, %v1794_v55 }
 0x1e8   : > { %732 = vadd.xlane.f32.xlu1 %v703_v57 }
 0x1ea   : > { %734 = vadd.xlane.f32.xlu0 %v704_v58 }
 0x1ec   : > { %736 = vadd.xlane.f32.xlu1 %v705_v59 }
 0x25a   : > { %v711_v60 = vpop.xlane.xlu1 %710 }
 0x25b   : > { %v740_v61 = vadd.f32 1e-12, %v711_v60  ;;  %v707_v62 = vpop.xlane.xlu0 %706 }
 0x25c   : > { %v738_v63 = vadd.f32 1e-12, %v707_v62 }
 0x25d   : > { %1456 = vrsqrt.f32 %v740_v61 }
 0x25e   : > { %1458 = vrsqrt.f32 %v738_v63  ;;  %v713_v0 = vpop.xlane.xlu1 %712 }
 0x25f   : > { %v741_v1 = vadd.f32 1e-12, %v713_v0  ;;  %v709_v2 = vpop.xlane.xlu0 %708 }
 0x260   : > { %v739_v3 = vadd.f32 1e-12, %v709_v2 }
 0x261   : > { %1460 = vrsqrt.f32 %v741_v1 }
 0x262   : > { %1462 = vrsqrt.f32 %v739_v3 }
 0x263   : > { %v719_v4 = vpop.xlane.xlu0 %718 }
 0x264   : > { %v744_v5 = vadd.f32 1e-12, %v719_v4  ;;  %v721_v6 = vpop.xlane.xlu1 %720 }
 0x265   : > { %v745_v7 = vadd.f32 1e-12, %v721_v6 }
 0x266   : > { %1464 = vrsqrt.f32 %v744_v5 }
 0x267   : > { %v1457_v8 = vpop.eup %1456  ;;  %1466 = vrsqrt.f32 %v745_v7  ;;  %v715_v9 = vpop.xlane.xlu0 %714 }
 0x268   : > { %v1459_v10 = vpop.eup %1458  ;;  %v1810_v11 = vmul.f32 %v1457_v8, %v711_v60  ;;  %v1813_v12 = vmul.f32 %v1457_v8, %v1683_v13  ;;  %v742_v14 = vadd.f32 1e-12, %v715_v9  ;;  %v717_v16 = vpop.xlane.xlu1 %716 }
 0x269   : > { %v1815_v18 = vmul.f32 %v1459_v10, %v707_v62  ;;  %v1818_v19 = vmul.f32 %v1459_v10, %v1686_v15  ;;  %v743_v21 = vadd.f32 1e-12, %v717_v16 }
 0x26a   : > { %1468 = vrsqrt.f32 %v742_v14 }
 0x26b   : > { %v1461_v22 = vpop.eup %1460  ;;  %1470 = vrsqrt.f32 %v743_v21  ;;  %v727_v23 = vpop.xlane.xlu0 %726 }
 0x26c   : > { %v1463_v24 = vpop.eup %1462  ;;  %v1820_v26 = vmul.f32 %v1461_v22, %v713_v0  ;;  %v1823_v28 = vmul.f32 %v1461_v22, %v1692_v17  ;;  %v748_v30 = vadd.f32 1e-12, %v727_v23  ;;  %v729_v31 = vpop.xlane.xlu1 %728 }
 0x26d   : > { %v1825_v33 = vmul.f32 %v1463_v24, %v709_v2  ;;  %v1828_v34 = vmul.f32 %v1463_v24, %v1700_v20  ;;  %v749_v35 = vadd.f32 1e-12, %v729_v31 }
 0x26e   : > { %1472 = vrsqrt.f32 %v748_v30 }
 0x26f   : > { %1474 = vrsqrt.f32 %v749_v35  ;;  %v723_v37 = vpop.xlane.xlu0 %722 }
 0x270   : > { %v1465_v38 = vpop.eup %1464  ;;  %v746_v40 = vadd.f32 1e-12, %v723_v37  ;;  %v725_v42 = vpop.xlane.xlu1 %724 }
 0x271   : > { %v1467_v43 = vpop.eup %1466  ;;  %v1830_v45 = vmul.f32 %v1465_v38, %v719_v4  ;;  %v1833_v46 = vmul.f32 %v1465_v38, %v1715_v25  ;;  %v747_v47 = vadd.f32 1e-12, %v725_v42 }
 0x272   : > { %v1835_v49 = vmul.f32 %v1467_v43, %v721_v6  ;;  %v1838_v50 = vmul.f32 %v1467_v43, %v1724_v29  ;;  %1476 = vrsqrt.f32 %v746_v40 }
 0x273   : > { %1478 = vrsqrt.f32 %v747_v47  ;;  %v731_v52 = vpop.xlane.xlu0 %730 }
 0x274   : > { %v1469_v54 = vpop.eup %1468  ;;  %v750_v56 = vadd.f32 1e-12, %v731_v52 }
 0x275   : > { %v1471_v57 = vpop.eup %1470  ;;  %v1840_v58 = vmul.f32 %v1469_v54, %v715_v9  ;;  %v1843_v59 = vmul.f32 %v1469_v54, %v1718_v27  ;;  %v733_v60 = vpop.xlane.xlu1 %732 }
 0x276   : > { %v1845_v61 = vmul.f32 %v1471_v57, %v717_v16  ;;  %v1848_v62 = vmul.f32 %v1471_v57, %v1732_v32  ;;  %1480 = vrsqrt.f32 %v750_v56  ;;  %v751_v63 = vadd.f32 1e-12, %v733_v60 }
 0x277   : > { %v735_v0 = vpop.xlane.xlu0 %734  ;;  %v887_v56 = vadd.f32 (!%p1297_p4), %v1700_v20, %v1686_v15  ;;  %v875_v57 = vmul.f32 (!%p1297_p4), 0.0, %v1718_v27 }
 0x278   : > { %v1473_v1 = vpop.eup %1472  ;;  %1482 = vrsqrt.f32 %v751_v63  ;;  %v752_v2 = vadd.f32 1e-12, %v735_v0  ;;  %v876_v63 = vmul.f32 (!%p1297_p4), 0.0, %v1732_v32 }
 0x279   : > { %v1475_v3 = vpop.eup %1474  ;;  %v1850_v4 = vmul.f32 %v1473_v1, %v727_v23  ;;  %v1853_v5 = vmul.f32 %v1473_v1, %v1745_v36  ;;  %v737_v6 = vpop.xlane.xlu1 %736  ;;  %v877_v1 = vmul.f32 (!%p1297_p4), 0.0, %v1715_v25 }
 0x27a   : > { %v1855_v7 = vmul.f32 %v1475_v3, %v729_v31  ;;  %v1858_v8 = vmul.f32 %v1475_v3, %v1756_v41  ;;  %1484 = vrsqrt.f32 %v752_v2  ;;  %v753_v9 = vadd.f32 1e-12, %v737_v6 }
 0x27b   : > { %v878_v3 = vmul.f32 (!%p1297_p4), 0.0, %v1724_v29 }
 0x27c   : > { %v1477_v10 = vpop.eup %1476  ;;  %1486 = vrsqrt.f32 %v753_v9  ;;  %v879_v9 = vmul.f32 (!%p1297_p4), 0.0, %v1750_v39 }
 0x27d   : > { %v1479_v14 = vpop.eup %1478  ;;  %v1860_v16 = vmul.f32 %v1477_v10, %v723_v37  ;;  %v1863_v21 = vmul.f32 %v1477_v10, %v1750_v39 }
 0x27e   : > { %v1865_v22 = vmul.f32 %v1479_v14, %v725_v42  ;;  %v1868_v23 = vmul.f32 %v1479_v14, %v1764_v44  ;;  %v880_v14 = vmul.f32 (!%p1297_p4), 0.0, %v1764_v44 }
 0x280   : > { %v1481_v24 = vpop.eup %1480 }
 0x281   : > { %v1870_v30 = vmul.f32 %v1481_v24, %v731_v52  ;;  %v1873_v31 = vmul.f32 %v1481_v24, %v1782_v51 }
 0x282   : > { %v1483_v35 = vpop.eup %1482 }
 0x283   : > { %2031 = vst [vmem:[#allocation12_spill] sm:$0xff] %v1870_v30  ;;  %v1875_v38 = vmul.f32 %v1483_v35, %v733_v60  ;;  %v1878_v37 = vmul.f32 %v1483_v35, %v1794_v55  ;;  %805 = sbr.rel (%p1297_p4) target bundleno = 891 (0x37b), region = 44  ;;  %v888_v60 = vadd.f32 (!%p1297_p4), %v887_v56, %v1683_v13  ;;  %v881_v35 = vmul.f32 (!%p1297_p4), 0.0, %v1745_v36 }
 0x284   : > { %v1485_v40 = vpop.eup %1484 }
 0x285   : > { %2032 = vst [vmem:[#allocation13_spill] sm:$0xff] %v1875_v38  ;;  %v1880_v43 = vmul.f32 %v1485_v40, %v735_v0  ;;  %v1883_v42 = vmul.f32 %v1485_v40, %v1777_v48  ;;  %v889_v0 = vadd.f32 (!%p1297_p4), %v888_v60, %v1692_v17  ;;  %v883_v60 = vmul.f32 (!%p1297_p4), 0.0, %v1782_v51 }
 0x286   : > { %v1487_v47 = vpop.eup %1486 }
 0x287   : > { %2033 = vst [vmem:[#allocation14_spill] sm:$0xff] %v1880_v43  ;;  %v1885_v54 = vmul.f32 %v1487_v47, %v737_v6  ;;  %v1888_v52 = vmul.f32 %v1487_v47, %v1788_v53  ;;  %v890_v2 = vadd.f32 (!%p1297_p4), %v889_v0, %v875_v57  ;;  %v882_v47 = vmul.f32 (!%p1297_p4), 0.0, %v1756_v41 }
 0x288   : > { %v884_v57 = vmul.f32 (!%p1297_p4), 0.0, %v1794_v55 }
 0x289   : > { %2034 = vst [vmem:[#allocation15_spill] sm:$0xff] %v1885_v54  ;;  %v891_v6 = vadd.f32 (!%p1297_p4), %v890_v2, %v876_v63  ;;  %v885_v63 = vmul.f32 (!%p1297_p4), 0.0, %v1777_v48 }
 0x28b   : > { %v892_v10 = vadd.f32 %v891_v6, %v877_v1  ;;  %v886_v1 = vmul.f32 0.0, %v1788_v53 }
 0x28d   : > { %v893_v24 = vadd.f32 %v892_v10, %v878_v3 }
 0x28f   : > { %v894_v40 = vadd.f32 %v893_v24, %v879_v9 }
 0x291   : > { %v895_v56 = vadd.f32 %v894_v40, %v880_v14 }
 0x293   : > { %v896_v54 = vadd.f32 %v895_v56, %v881_v35 }
 0x295   : > { %v897_v0 = vadd.f32 %v896_v54, %v882_v47 }
 0x297   : > { %v898_v2 = vadd.f32 %v897_v0, %v883_v60 }
 0x299   : > { %v899_v6 = vadd.f32 %v898_v2, %v884_v57 }
 0x29b   : > { %v900_v43 = vadd.f32 %v899_v6, %v885_v63 }
 0x29d   : > { %v901_v3 = vadd.f32 %v900_v43, %v886_v1 }
 0x29f   : > { %v902_v10 = vrot.slane %v901_v3, 4 }
 0x2a1   : > { %v903_v38 = vadd.f32 %v902_v10, %v901_v3 }
 0x2a3   : > { %v904_v9 = vrot.slane %v903_v38, 2 }
 0x2a5   : > { %v905_v24 = vadd.f32 %v904_v9, %v903_v38 }
 0x2a7   : > { %v906_v30 = vrot.slane %v905_v24, 1 }
 0x2a9   : > { %v907_v14 = vadd.f32 %v906_v30, %v905_v24 }
 0x2ab   : > { %v908_v40 = vmul.f32 0.03125, %v907_v14 }
 0x2ad   : > { %979 = vst [vmem:[#allocation2] sm:$0x1] %v908_v40  ;;  %v909_v35 = vsub.f32 %v1686_v15, %v908_v40  ;;  %v910_v54 = vsub.f32 %v1700_v20, %v908_v40  ;;  %v911_v47 = vsub.f32 %v1683_v13, %v908_v40  ;;  %v913_v56 = vsub.f32 %v1718_v27, %v908_v40 }
 0x2ae   : > { %v912_v60 = vsub.f32 %v1692_v17, %v908_v40  ;;  %v914_v43 = vsub.f32 %v1732_v32, %v908_v40  ;;  %v915_v38 = vsub.f32 %v1715_v25, %v908_v40  ;;  %v916_v2 = vsub.f32 %v1724_v29, %v908_v40 }
 0x2af   : > { %v941_v57 = vmul.f32 %v909_v35, %v909_v35  ;;  %v942_v0 = vmul.f32 %v910_v54, %v910_v54  ;;  %v929_v63 = vmul.f32 0.0, %v913_v56  ;;  %v943_v30 = vmul.f32 %v911_v47, %v911_v47 }
 0x2b0   : > { %v930_v1 = vmul.f32 0.0, %v914_v43  ;;  %v944_v15 = vmul.f32 %v912_v60, %v912_v60  ;;  %v917_v20 = vsub.f32 %v1750_v39, %v908_v40  ;;  %v931_v13 = vmul.f32 0.0, %v915_v38 }
 0x2b1   : > { %v957_v6 = vadd.f32 %v942_v0, %v941_v57  ;;  %v945_v3 = vmul.f32 %v929_v63, %v929_v63  ;;  %v918_v17 = vsub.f32 %v1764_v44, %v908_v40  ;;  %v932_v10 = vmul.f32 0.0, %v916_v2 }
 0x2b2   : > { %v946_v32 = vmul.f32 %v930_v1, %v930_v1  ;;  %v919_v24 = vsub.f32 %v1745_v36, %v908_v40  ;;  %v933_v25 = vmul.f32 0.0, %v917_v20  ;;  %v947_v14 = vmul.f32 %v931_v13, %v931_v13 }
 0x2b3   : > { %v958_v27 = vadd.f32 %v957_v6, %v943_v30  ;;  %v920_v29 = vsub.f32 %v1756_v41, %v908_v40  ;;  %v934_v54 = vmul.f32 0.0, %v918_v17  ;;  %v948_v47 = vmul.f32 %v932_v10, %v932_v10 }
 0x2b4   : > { %v921_v39 = vsub.f32 %v1782_v51, %v908_v40  ;;  %v935_v60 = vmul.f32 0.0, %v919_v24  ;;  %v949_v43 = vmul.f32 %v933_v25, %v933_v25  ;;  %v922_v44 = vsub.f32 %v1794_v55, %v908_v40 }
 0x2b5   : > { %v959_v9 = vadd.f32 %v958_v27, %v944_v15  ;;  %v936_v0 = vmul.f32 0.0, %v920_v29  ;;  %v950_v38 = vmul.f32 %v934_v54, %v934_v54  ;;  %v923_v36 = vsub.f32 %v1777_v48, %v908_v40 }
 0x2b6   : > { %v937_v30 = vmul.f32 0.0, %v921_v39  ;;  %v951_v2 = vmul.f32 %v935_v60, %v935_v60  ;;  %v924_v41 = vsub.f32 %v1788_v53, %v908_v40  ;;  %v938_v15 = vmul.f32 0.0, %v922_v44 }
 0x2b7   : > { %v960_v35 = vadd.f32 %v959_v9, %v945_v3  ;;  %v952_v6 = vmul.f32 %v936_v0, %v936_v0  ;;  %v939_v13 = vmul.f32 0.0, %v923_v36  ;;  %v997_v29 = vmul.f32 0.0, %v1843_v59 }
 0x2b8   : > { %v953_v51 = vmul.f32 %v937_v30, %v937_v30  ;;  %v940_v27 = vmul.f32 0.0, %v924_v41  ;;  %v954_v17 = vmul.f32 %v938_v15, %v938_v15  ;;  %v1000_v0 = vmul.f32 0.0, %v1838_v50 }
 0x2b9   : > { %v961_v56 = vadd.f32 %v960_v35, %v946_v32  ;;  %v955_v55 = vmul.f32 %v939_v13, %v939_v13  ;;  %v1001_v36 = vmul.f32 0.0, %v1863_v21  ;;  %v1003_v15 = vmul.f32 0.0, %v1853_v5 }
 0x2ba   : > { %v956_v9 = vmul.f32 %v940_v27, %v940_v27  ;;  %v1006_v27 = vmul.f32 0.0, %v1878_v37 }
 0x2bb   : > { %v962_v57 = vadd.f32 %v961_v56, %v947_v14  ;;  %v1009_v14 = vadd.f32 %v1828_v34, %v1818_v19  ;;  %v998_v56 = vmul.f32 0.0, %v1848_v62 }
 0x2bd   : > { %v963_v63 = vadd.f32 %v962_v57, %v948_v47  ;;  %v1010_v53 = vadd.f32 %v1009_v14, %v1813_v12 }
 0x2bf   : > { %v964_v1 = vadd.f32 %v963_v63, %v949_v43  ;;  %v1011_v54 = vadd.f32 %v1010_v53, %v1823_v28  ;;  %v999_v43 = vmul.f32 0.0, %v1833_v46 }
 0x2c1   : > { %v965_v20 = vadd.f32 %v964_v1, %v950_v38  ;;  %v1012_v39 = vadd.f32 %v1011_v54, %v997_v29  ;;  %v1002_v1 = vmul.f32 0.0, %v1868_v23 }
 0x2c3   : > { %v966_v3 = vadd.f32 %v965_v20, %v951_v2  ;;  %v1013_v57 = vadd.f32 %v1012_v39, %v998_v56  ;;  %v1004_v20 = vmul.f32 0.0, %v1858_v8 }
 0x2c5   : > { %v967_v10 = vadd.f32 %v966_v3, %v952_v6  ;;  %v1014_v38 = vadd.f32 %v1013_v57, %v999_v43  ;;  %v1560_v43 = vmov 0.0  }
 0x2c6   : > { %992 = vst.msk [vmem:[#allocation4] sm:$0x1] %vm990_vm4, %v1560_v43 }
 0x2c7   : > { %v968_v32 = vadd.f32 %v967_v10, %v953_v51  ;;  %v1015_v30 = vadd.f32 %v1014_v38, %v1000_v0  ;;  %v1005_v51 = vmul.f32 0.0, %v1873_v31  ;;  %v1007_v10 = vmul.f32 0.0, %v1883_v42 }
 0x2c9   : > { %v969_v24 = vadd.f32 %v968_v32, %v954_v17  ;;  %v1016_v41 = vadd.f32 %v1015_v30, %v1001_v36 }
 0x2cb   : > { %v970_v25 = vadd.f32 %v969_v24, %v955_v55  ;;  %v1017_v6 = vadd.f32 %v1016_v41, %v1002_v1 }
 0x2cd   : > { %v971_v48 = vadd.f32 %v970_v25, %v956_v9  ;;  %v1018_v13 = vadd.f32 %v1017_v6, %v1003_v15  ;;  %v1008_v25 = vmul.f32 0.0, %v1888_v52 }
 0x2cf   : > { %v972_v35 = vrot.slane %v971_v48, 4  ;;  %v1019_v3 = vadd.f32 %v1018_v13, %v1004_v20 }
 0x2d1   : > { %v973_v40 = vadd.f32 %v972_v35, %v971_v48  ;;  %v1020_v17 = vadd.f32 %v1019_v3, %v1005_v51 }
 0x2d3   : > { %v974_v47 = vrot.slane %v973_v40, 2  ;;  %v1021_v55 = vadd.f32 %v1020_v17, %v1006_v27 }
 0x2d5   : > { %v975_v60 = vadd.f32 %v974_v47, %v973_v40  ;;  %v1022_v48 = vadd.f32 %v1021_v55, %v1007_v10 }
 0x2d7   : > { %v976_v44 = vrot.slane %v975_v60, 1  ;;  %v1023_v35 = vadd.f32 %v1022_v48, %v1008_v25 }
 0x2d9   : > { %v977_v63 = vadd.f32 %v976_v44, %v975_v60  ;;  %v1024_v40 = vrot.slane %v1023_v35, 4 }
 0x2db   : > { %v978_v2 = vmul.f32 0.032258064, %v977_v63  ;;  %v1025_v29 = vadd.f32 %v1024_v40, %v1023_v35 }
 0x2dd   : > { %1488 = vrsqrt.f32 %v978_v2  ;;  %vm982_vm2 = vcmp.eq.f32.partialorder %v978_v2, inf  ;;  %v985_v9 = vand.u32 2147483648, %v978_v2  ;;  %vm984_vm3 = vcmp.eq.f32.partialorder %v978_v2, 0.0 }
 0x2de   : > { %v1026_v54 = vrot.slane %v1025_v29, 2 }
 0x2e0   : > { %v1027_v47 = vadd.f32 %v1026_v54, %v1025_v29 }
 0x2e2   : > { %v1028_v56 = vrot.slane %v1027_v47, 1 }
 0x2e4   : > { %v1029_v39 = vadd.f32 %v1028_v56, %v1027_v47 }
 0x2e6   : > { %v1030_v60 = vsub.f32 0.0, %v1029_v39 }
 0x2e7   : > { %v1489_v32 = vpop.eup %1488 }
 0x2e8   : > { %v981_v24 = vmul.f32 %v1489_v32, %v978_v2  ;;  %1031 = vst [vmem:[#allocation5] sm:$0x1] %v1030_v60 }
 0x2ea   : > { %v983_v14 = vsel %vm982_vm2, %v978_v2, %v981_v24 }
 0x2eb   : > { %v986_v53 = vsel %vm984_vm3, %v985_v9, %v983_v14 }
 0x2ec   : > { %987 = vadd.xlane.f32.xlu0 %v986_v53 }
 0x379   : > { %v988_v57 = vpop.xlane.xlu0 %987 }
 0x37a   : > { %991 = vst.msk [vmem:[#allocation3] sm:$0x1] %vm990_vm4, %v988_v57 }
 0x37b PF: > { %v1298_v44 = vadd.f32 -1.0, %v1815_v18  ;;  %v1299_v0 = vadd.f32 -1.0, %v1825_v33  ;;  %v1300_v38 = vadd.f32 -1.0, %v1810_v11  ;;  %v1301_v63 = vadd.f32 -1.0, %v1820_v26  ;;  %v2035_v48 = vld [vmem:[#allocation12_spill] sm:$0xff]  ;;  %p1314_p5 = scmp.ne.s32.totalorder %s1609_s25, 1 }
 0x37c   : > { %v1302_v2 = vadd.f32 -1.0, %v1840_v58  ;;  %v1303_v41 = vadd.f32 -1.0, %v1845_v61  ;;  %v1106_v20 = vadd.f32 %v1828_v34, %v1818_v19  ;;  %v1304_v18 = vadd.f32 -1.0, %v1830_v45 }
 0x37d   : > { %v1049_v36 = vmul.f32 %v1298_v44, %v1298_v44  ;;  %v1050_v30 = vmul.f32 %v1299_v0, %v1299_v0  ;;  %v1051_v1 = vmul.f32 %v1300_v38, %v1300_v38  ;;  %v1052_v15 = vmul.f32 %v1301_v63, %v1301_v63  ;;  %v2036_v53 = vld [vmem:[#allocation13_spill] sm:$0xff] }
 0x37e   : > { %v1053_v13 = vmul.f32 %v1302_v2, %v1302_v2  ;;  %v1107_v11 = vadd.f32 %v1106_v20, %v1813_v12  ;;  %v1305_v26 = vadd.f32 -1.0, %v1835_v49  ;;  %v1054_v51 = vmul.f32 %v1303_v41, %v1303_v41 }
 0x37f   : > { %v1081_v6 = vadd.f32 %v1050_v30, %v1049_v36  ;;  %v1306_v27 = vadd.f32 -1.0, %v1860_v16  ;;  %v1055_v61 = vmul.f32 %v1304_v18, %v1304_v18  ;;  %v1307_v19 = vadd.f32 -1.0, %v1865_v22  ;;  %v2037_v54 = vld [vmem:[#allocation14_spill] sm:$0xff] }
 0x380   : > { %v1108_v58 = vadd.f32 %v1107_v11, %v1823_v28  ;;  %v1056_v34 = vmul.f32 %v1305_v26, %v1305_v26  ;;  %v1308_v12 = vadd.f32 -1.0, %v1850_v4  ;;  %v1309_v28 = vadd.f32 -1.0, %v1855_v7  ;;  %v1032_v11 = vld [vmem:[#allocation4] sm:$0x1]  ;;  %v1105_v26 = vld [vmem:[#allocation5] sm:$0x1] }
 0x381   : > { %v1082_v33 = vadd.f32 %v1081_v6, %v1051_v1  ;;  %v1057_v32 = vmul.f32 %v1306_v27, %v1306_v27  ;;  %v1058_v24 = vmul.f32 %v1307_v19, %v1307_v19  ;;  %v2038_v39 = vld [vmem:[#allocation15_spill] sm:$0xff]  ;;  %vm1103_vm5 = vcmask 0  }
 0x382   : > { %v1109_v10 = vadd.f32 %v1108_v58, %v1843_v59  ;;  %v1310_v59 = vadd.f32 -1.0, %v2035_v48  ;;  %v1059_v14 = vmul.f32 %v1308_v12, %v1308_v12  ;;  %v1060_v40 = vmul.f32 %v1309_v28, %v1309_v28  ;;  %v1154_v28 = vld [vmem:[#allocation3] sm:$0x1] (!%p1314_p5) }
 0x383   : > { %v1083_v3 = vadd.f32 %v1082_v33, %v1052_v15  ;;  %vm1139_vm6 = vcmask (!%p1314_p5), 1040384  }
 0x384   : > { %v1110_v55 = vadd.f32 %v1109_v10, %v1848_v62  ;;  %v1311_v62 = vadd.f32 -1.0, %v2036_v53  ;;  %v1061_v47 = vmul.f32 %v1310_v59, %v1310_v59 }
 0x385   : > { %v1084_v17 = vadd.f32 %v1083_v3, %v1053_v13 }
 0x386   : > { %v1111_v9 = vadd.f32 %v1110_v55, %v1833_v46  ;;  %v1312_v46 = vadd.f32 -1.0, %v2037_v54  ;;  %v1062_v60 = vmul.f32 %v1311_v62, %v1311_v62 }
 0x387   : > { %v1085_v45 = vadd.f32 %v1084_v17, %v1054_v51 }
 0x388   : > { %v1112_v25 = vadd.f32 %v1111_v9, %v1838_v50  ;;  %v1313_v50 = vadd.f32 -1.0, %v2038_v39  ;;  %v1063_v44 = vmul.f32 %v1312_v46, %v1312_v46 }
 0x389   : > { %v1086_v49 = vadd.f32 %v1085_v45, %v1055_v61 }
 0x38a   : > { %v1113_v35 = vadd.f32 %v1112_v25, %v1863_v21  ;;  %v1064_v38 = vmul.f32 %v1313_v50, %v1313_v50 }
 0x38b   : > { %v1087_v16 = vadd.f32 %v1086_v49, %v1056_v34 }
 0x38c   : > { %v1114_v29 = vadd.f32 %v1113_v35, %v1868_v23 }
 0x38d   : > { %v1088_v22 = vadd.f32 %v1087_v16, %v1057_v32 }
 0x38e   : > { %v1115_v56 = vadd.f32 %v1114_v29, %v1853_v5 }
 0x38f   : > { %v1089_v4 = vadd.f32 %v1088_v22, %v1058_v24 }
 0x390   : > { %v1116_v57 = vadd.f32 %v1115_v56, %v1858_v8 }
 0x391   : > { %v1090_v7 = vadd.f32 %v1089_v4, %v1059_v14 }
 0x392   : > { %v1117_v0 = vadd.f32 %v1116_v57, %v1873_v31 }
 0x393   : > { %v1091_v43 = vadd.f32 %v1090_v7, %v1060_v40 }
 0x394   : > { %v1118_v23 = vadd.f32 %v1117_v0, %v1878_v37 }
 0x395   : > { %v1092_v21 = vadd.f32 %v1091_v43, %v1061_v47 }
 0x396   : > { %v1119_v30 = vadd.f32 %v1118_v23, %v1883_v42 }
 0x397   : > { %v1093_v63 = vadd.f32 %v1092_v21, %v1062_v60 }
 0x398   : > { %v1120_v5 = vadd.f32 %v1119_v30, %v1888_v52  ;;  %v1137_v52 = vld [vmem:[#allocation2] sm:$0x1] (!%p1314_p5) }
 0x399   : > { %v1094_v36 = vadd.f32 %v1093_v63, %v1063_v44  ;;  %v1138_v27 = vmul.f32 (!%p1314_p5), %v1137_v52, %v1137_v52 }
 0x39a   : > { %v1121_v41 = vrot.slane %v1120_v5, 4 }
 0x39b   : > { %v1095_v2 = vadd.f32 %v1094_v36, %v1064_v38  ;;  %v1140_v17 = vsel (!%p1314_p5), %vm1139_vm6, %v1138_v27, 0.0 }
 0x39c   : > { %v1122_v6 = vadd.f32 %v1121_v41, %v1120_v5  ;;  %1141 = vadd.xlane.f32.xlu0 (!%p1314_p5), %v1140_v17 }
 0x39d   : > { %v1096_v1 = vrot.slane %v1095_v2, 4 }
 0x39e   : > { %v1123_v8 = vrot.slane %v1122_v6, 2 }
 0x39f   : > { %v1097_v15 = vadd.f32 %v1096_v1, %v1095_v2 }
 0x3a0   : > { %v1124_v13 = vadd.f32 %v1123_v8, %v1122_v6 }
 0x3a1   : > { %v1098_v20 = vrot.slane %v1097_v15, 2 }
 0x3a2   : > { %v1125_v31 = vrot.slane %v1124_v13, 1 }
 0x3a3   : > { %v1099_v18 = vadd.f32 %v1098_v20, %v1097_v15 }
 0x3a4   : > { %v1126_v37 = vadd.f32 %v1125_v31, %v1124_v13 }
 0x3a5   : > { %v1100_v33 = vrot.slane %v1099_v18, 1  ;;  %1132 = sbr.rel (%p1314_p5) target bundleno = 1098 (0x44a), region = 48 }
 0x3a6   : > { %v1127_v42 = vadd.f32 %v1126_v37, %v1105_v26 }
 0x3a7   : > { %v1101_v51 = vadd.f32 %v1100_v33, %v1099_v18 }
 0x3a8   : > { %1128 = vst [vmem:[#allocation5] sm:$0x1] %v1127_v42 }
 0x3a9   : > { %v1102_v3 = vadd.f32 %v1101_v51, %v1032_v11 }
 0x3ab   : > { %1104 = vst.msk [vmem:[#allocation4] sm:$0x1] %vm1103_vm5, %v1102_v3 }
 0x3af   : > { %v1146_v58 = vld [vmem:[#allocation5] sm:$0x1] }
 0x3b0   : > { %v1147_v61 = vmul.f32 %v1146_v58, %v1137_v52 }
 0x3b2   : > { %v1148_v10 = vsel %vm1139_vm6, %v1147_v61, 0.0  ;;  %v1133_v19 = vld [vmem:[#allocation4] sm:$0x1] }
 0x3b3   : > { %1149 = vadd.xlane.f32.xlu0 %v1148_v10  ;;  %v1134_v34 = vmul.f32 100.0, %v1133_v19 }
 0x3b5   : > { %v1135_v45 = vmul.f32 0.00390625, %v1134_v34 }
 0x3b7   : > { %1136 = vst.msk [vmem:[#allocation6] sm:$0x1] %vm1103_vm5, %v1135_v45 }
 0x429   : > { %v1142_v55 = vpop.xlane.xlu0 %1141 }
 0x42a   : > { %v1144_v12 = vadd.f32 1e-12, %v1142_v55 }
 0x42c   : > { %1490 = vrsqrt.f32 %v1144_v12 }
 0x436   : > { %v1491_v49 = vpop.eup %1490 }
 0x440   : > { %v1150_v32 = vpop.xlane.xlu0 %1149 }
 0x441   : > { %v1152_v9 = vmul.f32 %v1491_v49, %v1150_v32 }
 0x443   : > { %v1153_v24 = vmul.f32 0.004464286, %v1152_v9 }
 0x445   : > { %v1155_v16 = vsub.f32 %v1154_v28, %v1153_v24 }
 0x447   : > { %v1156_v25 = vadd.f32 1.0, %v1155_v16 }
 0x449   : > { %1157 = vst.msk [vmem:[#allocation8] sm:$0x1] %vm1103_vm5, %v1156_v25 }
 0x44a PF: > { %p1423_p6 = scmp.eq.s32.totalorder %s1609_s25, 1  ;;  %s1561_s28 = smov [#allocation6]  }
 0x44b   : > { %s1174_s16 = sshll.u32 %s1561_s28, 4  ;;  %s1562_s17 = smov [#allocation8]   ;;  %s1175_s16 = int_to_ptr.vmem [resolvable:$true] %s1174_s16 }
 0x44c   : > { %s1185_s18 = sshll.u32 %s1562_s17, 4  ;;  %s1492_s19 = scalar_lea.vmem %s1175_s16, 16  ;;  %s1186_s18 = int_to_ptr.vmem [resolvable:$true] %s1185_s18 }
 0x44d   : > { %p1493_p7 = scmp.ne.s32.totalorder %s1175_s16, %s1492_s19  ;;  %s1498_s20 = scalar_lea.vmem %s1175_s16, 32 }
 0x44e   : > { %p1499_p10 = scmp.lt.s32.totalorder %s1175_s16, %s1175_s16  ;;  %p1500_p11 = scmp.lt.s32.totalorder %s1498_s20, %s1492_s19 }
 0x44f   : > { %p1494_p8 = pnand %p1493_p7, %p1423_p6 }
 0x450   : > { %p1501_p12 = por %p1500_p11, %p1499_p10 }
 0x451   : > { %p1495_p9 = pneg %p1494_p8 }
 0x453   : > { %p1502_p13 = pnand %p1501_p12, %p1495_p9 }
 0x455   : > { %1505 = shalt.err (!%p1502_p13)
}
 0x456   : > { %s1506_s23 = scalar_lea.hbm %s2029_s6, 16 }
 0x457   : > { %p1507_p0 = scmp.ne.s32.totalorder %s2029_s6, %s1506_s23  ;;  %p1512_p3 = scmp.lt.u32.totalorder %s1506_s23, %s2029_s6 }
 0x459   : > { %p1508_p1 = pnand %p1507_p0, %p1423_p6 }
 0x45b   : > { %p1509_p2 = pneg %p1508_p1 }
 0x45d   : > { %p1514_p4 = pnand %p1512_p3, %p1509_p2 }
 0x45f   : > { %1517 = shalt.err (!%p1514_p4)
}
 0x460   : > { %1416 = dma.vmem_to_hbm [thread:$0]  (%p1423_p6), %s1175_s16, 16, %s2029_s6, [#allocation7]  }
 0x461   : > { %s1518_s10 = scalar_lea.vmem %s1186_s18, 16  ;;  %s1524_s11 = scalar_lea.vmem %s1186_s18, 32 }
 0x462   : > { %p1519_p5 = scmp.ne.s32.totalorder %s1186_s18, %s1518_s10  ;;  %p1525_p9 = scmp.lt.s32.totalorder %s1186_s18, %s1186_s18 }
 0x463   : > { %p1526_p10 = scmp.lt.s32.totalorder %s1524_s11, %s1518_s10 }
 0x464   : > { %p1520_p7 = pnand %p1519_p5, %p1423_p6 }
 0x465   : > { %p1527_p11 = por %p1526_p10, %p1525_p9 }
 0x466   : > { %p1521_p8 = pneg %p1520_p7 }
 0x468   : > { %p1528_p12 = pnand %p1527_p11, %p1521_p8 }
 0x46a   : > { %1531 = shalt.err (!%p1528_p12)
}
 0x46b   : > { %s1532_s14 = scalar_lea.hbm %s2030_s7, 16 }
 0x46c   : > { %p1533_p13 = scmp.ne.s32.totalorder %s2030_s7, %s1532_s14  ;;  %p1538_p2 = scmp.lt.u32.totalorder %s1532_s14, %s2030_s7 }
 0x46e   : > { %p1534_p0 = pnand %p1533_p13, %p1423_p6 }
 0x470   : > { %p1535_p1 = pneg %p1534_p0 }
 0x472   : > { %p1540_p3 = pnand %p1538_p2, %p1535_p1 }
 0x474   : > { %1543 = shalt.err (!%p1540_p3)
}
 0x475   : > { %1418 = dma.vmem_to_hbm [thread:$0]  (%p1423_p6), %s1186_s18, 16, %s2030_s7, [#allocation9]  }
 0x476   : > { %1549 = dma.done.wait (%p1423_p6), [#allocation7], 16  }
 0x477   : > { %1551 = vsyncadd (%p1423_p6), [#allocation7], 4294967280 }
 0x478   : > { %1553 = dma.done.wait (%p1423_p6), [#allocation9], 16  }
 0x479   : > { %1555 = vsyncadd (%p1423_p6), [#allocation9], 4294967280 }
 0x47a PF: > { %s20_s24 = sadd.s32 1, %s1558_s24  }
 0x47b   : > { %p17_p4 = scmp.ge.s32.totalorder %s20_s24, 4  }
 0x47d   :  { %19 = sbr.rel (!%p17_p4) target bundleno = 2 (0x2), region = 95 }
 0x484   :  { %1210 = vsyncpa [#allocation7], 1 }
 0x485   :  { %1212 = vsyncpa [#allocation7 + $0x1], 1 }
 0x486   :  { %1213 = vsyncpa [#allocation9], 1 }

</bundles_post_ra>
